<compile_context>
chip_gen: v7x
topology: tpu7x:2x2x1
jax: 0.10.0
libtpu: 0.0.40
codegen_flags: <defaults>
</compile_context>

<pallas_src>
import functools

import jax
import jax.numpy as jnp
from jax.experimental import pallas as pl
from jax.experimental.pallas import tpu as pltpu


def _round_up(a, b):
    return ((a + b - 1) // b) * b


def _vmem_capacity_bytes():
    try:
        return int(pltpu.get_tpu_info().vmem_capacity_bytes)
    except Exception:
        return 128 << 20  # conservative default (v5e/v6e)


def _linear_kernel_acc_out(x_ref, wt_ref, o_ref):
    """f32 output: accumulate directly into the resident output block."""
    k = pl.program_id(2)

    @pl.when(k == 0)
    def _():
        o_ref[...] = jnp.zeros_like(o_ref)

    o_ref[...] += jnp.dot(
        x_ref[...], wt_ref[...], preferred_element_type=jnp.float32
    )


def _linear_kernel_scratch(x_ref, wt_ref, o_ref, acc_ref):
    """Narrow output dtypes: f32 scratch accumulator, cast on last K step."""
    k = pl.program_id(2)

    @pl.when(k == 0)
    def _():
        acc_ref[...] = jnp.zeros_like(acc_ref)

    acc_ref[...] += jnp.dot(
        x_ref[...], wt_ref[...], preferred_element_type=jnp.float32
    )

    @pl.when(k == pl.num_programs(2) - 1)
    def _():
        o_ref[...] = acc_ref[...].astype(o_ref.dtype)


def _pick_tiles(M, K, N):
    """Generation-aware MXU/VMEM-friendly tile sizes.

    Big output-stationary tiles on v5e/v6e (128 MiB VMEM), capped for v7x
    (64 MiB VMEM).  Small dims use the full extent (layout-legal).
    """
    cap = _vmem_capacity_bytes()
    if cap >= (100 << 20):        # v5e / v6e: 128 MiB VMEM per TensorCore
        tm_t, tn_t, tk_t = 1024, 1024, 1024
    else:                         # v7x: 64 MiB VMEM per TensorCore
        tm_t, tn_t, tk_t = 512, 1024, 1024

    tm = M if M <= tm_t else tm_t          # multiple of 8 (or full M)
    tn = N if N <= tn_t else tn_t          # multiple of 128 (or full N)

    if K <= tk_t:
        tk = K                              # full-K tile: always layout-legal
    else:
        tk = 0
        t = (tk_t // 128) * 128
        while t >= 128:                     # largest 128-multiple divisor <= tk_t
            if K % t == 0:
                tk = t
                break
            t -= 128
        if tk == 0:
            # No clean divisor: keep tk_t and zero-pad K in the wrapper
            # (costs < 1 extra K step of work instead of a full-K VMEM blowup).
            tk = tk_t
    return tm, tn, tk


@functools.partial(jax.jit, static_argnames=("tm", "tn", "tk", "out_dtype"))
def _linear_2d(x2d, wt, tm, tn, tk, out_dtype):
    M, K = x2d.shape
    Kw, N = wt.shape
    assert K == Kw, (K, Kw)

    # Zero-pad K so every reduction block is full: a partial K block would
    # accumulate out-of-bounds garbage into valid output rows.
    Kp = _round_up(K, tk)
    if Kp != K:
        x2d = jnp.pad(x2d, ((0, 0), (0, Kp - K)))
        wt = jnp.pad(wt, ((0, Kp - K), (0, 0)))
        # (For awkward K the weight pad can also be done once via prepare_weight.)

    mt, nt, kt = pl.cdiv(M, tm), pl.cdiv(N, tn), Kp // tk
    ib = jnp.dtype(x2d.dtype).itemsize
    wb = jnp.dtype(wt.dtype).itemsize
    ob = jnp.dtype(out_dtype).itemsize

    # Pick the grid-axis ordering that re-streams the cheaper operand:
    #   N outermost -> x re-read once per N tile;  M outermost -> W re-read
    #   once per M tile.
    x_restream = M * Kp * ib * nt
    w_restream = N * Kp * wb * mt
    n_outer = x_restream <= w_restream

    if n_outer:
        grid = (nt, mt, kt)
        x_spec = pl.BlockSpec((tm, tk), lambda j, i, k: (i, k))
        w_spec = pl.BlockSpec((tk, tn), lambda j, i, k: (k, j))
        o_spec = pl.BlockSpec((tm, tn), lambda j, i, k: (i, j))
    else:
        grid = (mt, nt, kt)
        x_spec = pl.BlockSpec((tm, tk), lambda i, j, k: (i, k))
        w_spec = pl.BlockSpec((tk, tn), lambda i, j, k: (k, j))
        o_spec = pl.BlockSpec((tm, tn), lambda i, j, k: (i, j))

    if jnp.dtype(out_dtype) == jnp.dtype(jnp.float32):
        kernel = _linear_kernel_acc_out
        scratch = []
        acc_bytes = 0
    else:
        kernel = _linear_kernel_scratch
        scratch = [pltpu.VMEM((tm, tn), jnp.float32)]
        acc_bytes = tm * tn * 4

    # Scoped VMEM budget: double-buffered x / W.T / out tiles (+ accumulator),
    # clamped to a fraction of the chip's real VMEM (64 MiB on v7x, 128 MiB on
    # v5e/v6e) rather than a hard-coded constant.
    need = 2 * (tm * tk * ib + tk * tn * wb + tm * tn * ob) + acc_bytes
    cap = _vmem_capacity_bytes()
    vmem_limit = int(min(0.9 * cap, max(32 << 20, int(1.3 * need))))

    return pl.pallas_call(
        kernel,
        out_shape=jax.ShapeDtypeStruct((M, N), out_dtype),
        grid_spec=pltpu.PrefetchScalarGridSpec(
            num_scalar_prefetch=0,
            grid=grid,
            in_specs=[x_spec, w_spec],
            out_specs=o_spec,
            scratch_shapes=scratch,
        ),
        compiler_params=pltpu.CompilerParams(
            dimension_semantics=("parallel", "parallel", "arbitrary"),
            vmem_limit_bytes=vmem_limit,
        ),
    )(x2d, wt)


def prepare_weight(weight, dtype=None):
    """One-time transform of a torch-layout (out, in) weight to (in, out).

    Pass dtype=jnp.bfloat16 to halve HBM weight traffic and hit native MXU
    rate; the kernel always accumulates in f32.
    """
    wt = jnp.asarray(weight).T
    if dtype is not None:
        wt = wt.astype(dtype)
    return wt


def linear(x, wt, *, tm=None, tn=None, tk=None, compute_dtype=None):
    """y = x @ W.T, with W.T pre-transposed as `wt` of shape (in, out)."""
    in_features, out_features = wt.shape
    assert x.shape[-1] == in_features
    out_dtype = jnp.dtype(x.dtype)            # output follows x, like torch
    x2d = x.reshape(-1, in_features)
    if compute_dtype is not None:
        x2d = x2d.astype(compute_dtype)       # e.g. bf16 operands, f32 accum
    M = x2d.shape[0]

    dtm, dtn, dtk = _pick_tiles(M, in_features, out_features)
    tm = dtm if tm is None else tm
    tn = dtn if tn is None else tn
    tk = dtk if tk is None else tk
    # Layout-legality guards for user overrides (K is padded to tk inside).
    assert tm == M or tm % 8 == 0, tm
    assert tn == out_features or tn % 128 == 0, tn
    assert tk == in_features or tk % 128 == 0, tk

    y2d = _linear_2d(x2d, wt, tm, tn, tk, out_dtype)
    return y2d.reshape(*x.shape[:-1], out_features)


def init_weight(key, out_features, in_features, dtype=jnp.float32):
    # Matches torch.nn.init.trunc_normal_ defaults: mean=0, std=1, a=-2, b=2.
    w = jax.random.truncated_normal(
        key, lower=-2.0, upper=2.0, shape=(out_features, in_features)
    )
    return w.astype(dtype)


if __name__ == "__main__":
    key = jax.random.PRNGKey(0)
    k_x, k_w, k_x2, k_w2, k_x3, k_w3 = jax.random.split(key, 6)

    # --- Small shape consistent with the module's forward ---
    batch, seq, in_features, out_features = 2, 8, 32, 64
    x = jax.random.normal(k_x, (batch, seq, in_features), dtype=jnp.float32)
    weight = init_weight(k_w, out_features, in_features)   # (out, in), torch layout
    wt = prepare_weight(weight)                             # (in, out), done once

    y = linear(x, wt)
    jax.block_until_ready(y)
    y_ref = x @ weight.T
    assert y.shape == (batch, seq, out_features)
    assert jnp.allclose(y, y_ref, atol=1e-5, rtol=1e-5)

    # --- M/N/K tiling + K accumulation via explicit small tiles (grid 2x2x3) ---
    # Integer-valued inputs keep the f32 MXU accumulation exact.
    M2, K2, N2 = 256, 384, 256
    x2 = jax.random.randint(k_x2, (M2, K2), -2, 3).astype(jnp.float32)
    w2 = jax.random.randint(k_w2, (N2, K2), -2, 3).astype(jnp.float32)
    y2 = linear(x2, prepare_weight(w2), tm=128, tn=128, tk=128)
    jax.block_until_ready(y2)
    y2_ref = jnp.dot(x2, w2.T, preferred_element_type=jnp.float32)
    assert y2.shape == (M2, N2)
    assert jnp.allclose(y2, y2_ref, atol=1e-3, rtol=1e-3)

    # --- Awkward K (no 128-multiple divisor) exercising the zero-pad path ---
    M3, K3, N3 = 128, 1300, 256
    x3 = jax.random.randint(k_x3, (M3, K3), -2, 3).astype(jnp.float32)
    w3 = jax.random.randint(k_w3, (N3, K3), -2, 3).astype(jnp.float32)
    y3 = linear(x3, prepare_weight(w3))
    jax.block_until_ready(y3)
    y3_ref = jnp.dot(x3, w3.T, preferred_element_type=jnp.float32)
    assert y3.shape == (M3, N3)
    assert jnp.allclose(y3, y3_ref, atol=1e-3, rtol=1e-3)

    print("KERNEL_OK")
</pallas_src>

<mosaic_0001>
module attributes {stable_mosaic.version = 11 : i64} {
  func.func @_linear_kernel_acc_out(%arg0: i32, %arg1: i32, %arg2: i32, %arg3: memref<16x32xf32, #tpu.memory_space<vmem>>, %arg4: memref<32x64xf32, #tpu.memory_space<vmem>>, %arg5: memref<16x64xf32, #tpu.memory_space<vmem>>) attributes {dimension_semantics = [#tpu.dimension_semantics<parallel>, #tpu.dimension_semantics<parallel>, #tpu.dimension_semantics<arbitrary>], iteration_bounds = array<i64: 1, 1, 1>, scalar_prefetch = 0 : i64, scratch_operands = 0 : i64, tpu.core_type = #tpu.core_type<tc>, window_params = [{transform_indices = @transform_0, window_bounds = array<i64: 16, 32>}, {transform_indices = @transform_1, window_bounds = array<i64: 32, 64>}, {transform_indices = @transform_2, window_bounds = array<i64: 16, 64>}]} {
    %c0_i32 = arith.constant 0 : i32
    %0 = arith.cmpi eq, %arg2, %c0_i32 : i32
    %1 = arith.extui %0 : i1 to i32
    %c0_i32_0 = arith.constant 0 : i32
    %2 = arith.cmpi ne, %1, %c0_i32_0 : i32
    scf.if %2 {
      %cst_8 = arith.constant 0.000000e+00 : f32
      %9 = vector.broadcast %cst_8 : f32 to vector<16x64xf32>
      %c0_9 = arith.constant 0 : index
      %c0_10 = arith.constant 0 : index
      %10 = vector.load %arg5[%c0_9, %c0_10] : memref<16x64xf32, #tpu.memory_space<vmem>>, vector<16x64xf32>
      tpu.vector_store %arg5[%c0_9, %c0_10], %9 {strides = array<i32>} : memref<16x64xf32, #tpu.memory_space<vmem>>, vector<16x64xf32>,
    } else {
    }
    %c0 = arith.constant 0 : index
    %c0_1 = arith.constant 0 : index
    %3 = vector.load %arg5[%c0, %c0_1] : memref<16x64xf32, #tpu.memory_space<vmem>>, vector<16x64xf32>
    %c0_2 = arith.constant 0 : index
    %c0_3 = arith.constant 0 : index
    %4 = vector.load %arg3[%c0_2, %c0_3] : memref<16x32xf32, #tpu.memory_space<vmem>>, vector<16x32xf32>
    %c0_4 = arith.constant 0 : index
    %c0_5 = arith.constant 0 : index
    %5 = vector.load %arg4[%c0_4, %c0_5] : memref<32x64xf32, #tpu.memory_space<vmem>>, vector<32x64xf32>
    %cst = arith.constant dense<0.000000e+00> : vector<16x64xf32>
    %6 = tpu.matmul %4, %5, %cst {dimension_numbers = #tpu.dot_dimension_numbers<[1], [0], [0], [1], [0, 0, 1, 1], [], []>} : vector<16x32xf32>, vector<32x64xf32>, vector<16x64xf32> -> vector<16x64xf32>
    %7 = arith.addf %3, %6 : vector<16x64xf32>
    %c0_6 = arith.constant 0 : index
    %c0_7 = arith.constant 0 : index
    %8 = vector.load %arg5[%c0_6, %c0_7] : memref<16x64xf32, #tpu.memory_space<vmem>>, vector<16x64xf32>
    tpu.vector_store %arg5[%c0_6, %c0_7], %7 {strides = array<i32>} : memref<16x64xf32, #tpu.memory_space<vmem>>, vector<16x64xf32>,
    return
  }
  func.func @transform_0(%arg0: i32, %arg1: i32, %arg2: i32) -> (i32, i32) {
    %c0_i32 = arith.constant 0 : i32
    return %arg1, %arg2 : i32, i32
  }
  func.func @transform_1(%arg0: i32, %arg1: i32, %arg2: i32) -> (i32, i32) {
    %c0_i32 = arith.constant 0 : i32
    return %arg2, %arg0 : i32, i32
  }
  func.func @transform_2(%arg0: i32, %arg1: i32, %arg2: i32) -> (i32, i32) {
    %c0_i32 = arith.constant 0 : i32
    return %arg1, %arg0 : i32, i32
  }
}

</mosaic_0001>

<bundles_post_ra>
// kernel: _linear_2d.1
= control target key start
LH: loop header
LB: loop body
LE: loop exit
PB: predicated region body
PF: predicated region fallthrough
CT: control target
= control target key end

     0   :  { %7 = vsyncpa [#allocation3], 0  ;;  %s335_s0 = inlined_call_operand.hbm [shape: f32[16,32], index: 0, kind: input, shape index: {}]   ;;  %s336_s1 = inlined_call_operand.hbm [shape: f32[32,64], index: 1, kind: input, shape index: {}]   ;;  %s337_s2 = inlined_call_operand.hbm [shape: f32[16,64], index: 2, kind: output, shape index: {}]  }
   0x1   :  { %8 = vsyncpa [#allocation6], 0 }
   0x2   :  { %9 = vsyncpa [#allocation4], 0  ;;  %s265_s9 = smov [#allocation2]   ;;  %s193_s13 = scalar_lea.hbm %s335_s0, 256 }
   0x3   :  { %s15_s10 = sshll.u32 %s265_s9, 4  ;;  %p194_p0 = scmp.ne.s32.totalorder %s335_s0, %s193_s13  ;;  %s16_s10 = int_to_ptr.vmem [resolvable:$true] %s15_s10 }
   0x4   :  { %p197_p1 = scmp.lt.u32.totalorder %s193_s13, %s335_s0 }
   0x6   :  { %p199_p2 = pnand %p197_p1, %p194_p0 }
   0x8   :  { %202 = shalt.err (!%p199_p2)
}
   0x9   :  { %s203_s18 = scalar_lea.vmem %s16_s10, 256  ;;  %p208_p4 = scmp.lt.s32.totalorder %s16_s10, %s16_s10 }
   0xa   :  { %p204_p3 = scmp.ne.s32.totalorder %s16_s10, %s203_s18  ;;  %p209_p5 = scmp.lt.s32.totalorder %s203_s18, %s203_s18 }
   0xc   :  { %p210_p6 = por %p209_p5, %p208_p4 }
   0xe   :  { %p211_p7 = pnand %p210_p6, %p204_p3 }
  0x10   :  { %214 = shalt.err (!%p211_p7)
}
  0x11   :  { %s266_s19 = smov 128   ;;  %s267_s20 = smov 8  }
  0x12   :  { %21 = dma.hbm_to_vmem [thread:$0]  %s335_s0, 256, %s16_s10, [#allocation3], %s266_s19, %s266_s19, %s267_s20  }
  0x13   :  { %s268_s23 = smov [#allocation5]   ;;  %s215_s27 = scalar_lea.hbm %s336_s1, 512 }
  0x14   :  { %s27_s24 = sshll.u32 %s268_s23, 4  ;;  %p216_p8 = scmp.ne.s32.totalorder %s336_s1, %s215_s27  ;;  %s28_s24 = int_to_ptr.vmem [resolvable:$true] %s27_s24 }
  0x15   :  { %p219_p9 = scmp.lt.u32.totalorder %s215_s27, %s336_s1 }
  0x17   :  { %p221_p10 = pnand %p219_p9, %p216_p8 }
  0x19   :  { %224 = shalt.err (!%p221_p10)
}
  0x1a   :  { %s225_s4 = scalar_lea.vmem %s28_s24, 512  ;;  %p230_p12 = scmp.lt.s32.totalorder %s28_s24, %s28_s24 }
  0x1b   :  { %p226_p11 = scmp.ne.s32.totalorder %s28_s24, %s225_s4  ;;  %p231_p13 = scmp.lt.s32.totalorder %s225_s4, %s225_s4 }
  0x1d   :  { %p232_p0 = por %p231_p13, %p230_p12 }
  0x1f   :  { %p233_p1 = pnand %p232_p0, %p226_p11 }
  0x21   :  { %236 = shalt.err (!%p233_p1)
}
  0x22   :  { %33 = dma.hbm_to_vmem [thread:$0]  %s336_s1, 512, %s28_s24, [#allocation6], %s266_s19, %s266_s19, %s267_s20  }
  0x23   :  { %259 = dma.done.wait [#allocation3], 256  }
  0x24   :  { %260 = vsyncadd [#allocation3], 4294967040 }
  0x25   :  { %261 = dma.done.wait [#allocation6], 512  }
  0x26   :  { %262 = vsyncadd [#allocation6], 4294966784  ;;  %vm44_vm0 = vcmask 523264   ;;  %v269_v0 = vmov 0.0   ;;  %vm55_vm1 = vcmask 261120   ;;  %v51_v1 = vld [vmem:[#allocation5] sm:$0xff] }
  0x27   :  { %46 = vst.msk [vmem:[#allocation7 + $0x8] sm:$0xff] %vm44_vm0, %v269_v0  ;;  %45 = vst.msk [vmem:[#allocation7] sm:$0xff] %vm44_vm0, %v269_v0  ;;  %v52_v2 = vld [vmem:[#allocation5 + $0x8] sm:$0xff]  ;;  %v53_v3 = vld [vmem:[#allocation5 + $0x10] sm:$0xff]  ;;  %s270_s1 = smov [#allocation7]  }
  0x28   :  { %v179_v4 = vpack.c.bf16 %v52_v2, %v51_v1  ;;  %v54_v5 = vld [vmem:[#allocation5 + $0x18] sm:$0xff]  ;;  %v49_v6 = vld [vmem:[#allocation2] sm:$0xff]  ;;  %s147_s6 = sshll.u32 %s270_s1, 4  ;;  %s148_s6 = int_to_ptr.vmem [resolvable:$true] %s147_s6 }
  0x29   :  { %v183_v7 = vpack.c.bf16 %v54_v5, %v53_v3  ;;  %176 = vmatprep.mubr.msk.f32.mxu0 %vm55_vm1, %v49_v6  ;;  %v50_v8 = vld [vmem:[#allocation2 + $0x8] sm:$0xff]  ;;  %s237_s7 = scalar_lea.vmem %s148_s6, 256  ;;  %p242_p3 = scmp.lt.s32.totalorder %s148_s6, %s148_s6 }
  0x2a   :  { %180 = vmatprep.subr.bf16.mxu0 %v179_v4  ;;  %p238_p2 = scmp.ne.s32.totalorder %s148_s6, %s237_s7  ;;  %p243_p4 = scmp.lt.s32.totalorder %s237_s7, %s237_s7 }
  0x2b   :  { %182 = vmatpush3.bf16.msra.mxu0 %v179_v4 }
  0x2c   :  { %184 = vmatprep.subr.bf16.mxu0 %v183_v7  ;;  %p244_p5 = por %p243_p4, %p242_p3 }
  0x2e   :  { %v48_v9 = vld [vmem:[#allocation7 + $0x8] sm:$0xff]  ;;  %v47_v10 = vld [vmem:[#allocation7] sm:$0xff]  ;;  %p245_p6 = pnand %p244_p5, %p238_p2 }
  0x2f   :  { %186 = vmatpush3.bf16.msra.mxu0 %v183_v7 }
  0x32   :  { %177 = vmatmul.mubr.msk.f32.vlgmr.msra.gmra.mrb[0].mxu0 %vm55_vm1, %v50_v8 }
 0x105   :  { %v178_v11 = vpop.f32.mrb[0].mxu0 }
 0x106   :  { %v138_v12 = vadd.f32 %v178_v11, %v48_v9  ;;  %v128_v13 = vpop.f32.mrb[1].mxu0 }
 0x107   :  { %v137_v14 = vadd.f32 %v128_v13, %v47_v10 }
 0x108   :  { %141 = vst.msk [vmem:[#allocation7 + $0x8] sm:$0xff] %vm44_vm0, %v138_v12 }
 0x109   :  { %140 = vst.msk [vmem:[#allocation7] sm:$0xff] %vm44_vm0, %v137_v14 }
 0x10a   :  { %248 = shalt.err (!%p245_p6)
}
 0x10b   :  { %s249_s10 = scalar_lea.hbm %s337_s2, 256 }
 0x10c   :  { %p250_p7 = scmp.ne.s32.totalorder %s337_s2, %s249_s10  ;;  %p253_p8 = scmp.lt.u32.totalorder %s249_s10, %s337_s2 }
 0x10e   :  { %p255_p9 = pnand %p253_p8, %p250_p7 }
 0x110   :  { %258 = shalt.err (!%p255_p9)
}
 0x111   :  { %153 = dma.vmem_to_hbm [thread:$0]  %s148_s6, 256, %s337_s2, [#allocation4], %s266_s19, %s266_s19, %s267_s20  }
 0x112   :  { %263 = dma.done.wait [#allocation4], 256  }
 0x113   :  { %264 = vsyncadd [#allocation4], 4294967040 }
 0x114   :  { %157 = vsyncpa [#allocation3], 1 }
 0x115   :  { %158 = vsyncpa [#allocation6], 1 }
 0x116   :  { %159 = vsyncpa [#allocation4], 1 }

</bundles_post_ra>
